<compile_context>
chip_gen: v6e
topology: v6e:2x2x1
jax: 0.10.0
libtpu: 0.0.40
codegen_flags: <defaults>
</compile_context>

<pallas_src>
import functools

import jax
import jax.numpy as jnp
from jax import lax
from jax.experimental import pallas as pl
from jax.experimental.pallas import tpu as pltpu

_LOG2E = 1.4426950408889634


def _round_up(x, m):
    return ((x + m - 1) // m) * m


def _rbf_kernel(x_ref, w_ref, c_ref, il_ref, o_ref, *, td, qp, k, b_active,
                unroll):
    # x_ref  : (TB, Qp)       f32  input means (batch tile)
    # w_ref  : (td, K, Qp)    f32  mixture weights
    # c_ref  : (td, K, Qp)    f32  centers
    # il_ref : (td, K, Qp)    f32  log2(e) / (softplus(_l) + 1e-6)
    # o_ref  : (TB, td*Qp)    f32  lane-dense output tile
    #
    # Hoist the cross-sublane broadcast of x out of the per-d loop.
    xb = jnp.broadcast_to(x_ref[:b_active][:, None, :], (b_active, k, qp))

    def body(d, carry):
        w = w_ref[d]                                   # (K, Qp)
        c = c_ref[d]                                   # (K, Qp)
        il = il_ref[d]                                 # (K, Qp)
        mu = (xb - c[None, :, :]) * il[None, :, :]     # (b_active, K, Qp)
        res = jnp.exp2(-jnp.abs(mu)) * w[None, :, :]   # exp2: log2e pre-folded
        off = pl.multiple_of(d * qp, 128)              # aligned, unmasked lanes
        o_ref[pl.ds(0, b_active), pl.ds(off, qp)] = jnp.sum(res, axis=1)
        return carry

    # fori_loop bounds live ranges (unroll only for short, fixed trip-counts).
    lax.fori_loop(0, td, body, 0, unroll=unroll)


def absolute_exponential_rbf(x_mean, w, c, l_raw, *, td=None, tb=None):
    """x_mean: [B, 1, Q]; w, c, l_raw: [D, Q, K]  ->  [B, D, Q] (fp32)."""
    B = x_mean.shape[0]
    D, Q, K = w.shape
    assert x_mean.shape == (B, 1, Q), x_mean.shape

    # ---- parameter preprocessing (plain JAX glue; cacheable across calls) ----
    inv_l = _LOG2E / (jax.nn.softplus(l_raw) + 1e-6)   # fold log2(e): kernel uses exp2
    w_kq = jnp.transpose(w, (0, 2, 1)).astype(jnp.float32)       # [D, K, Q]
    c_kq = jnp.transpose(c, (0, 2, 1)).astype(jnp.float32)       # [D, K, Q]
    il_kq = jnp.transpose(inv_l, (0, 2, 1)).astype(jnp.float32)  # [D, K, Q]
    x = x_mean.reshape(B, Q).astype(jnp.float32)

    # ---- pad Q to a lane-dense multiple of 128 --------------------------------
    # Padded lanes get w = 0, so they contribute exactly 0 to the K-sum.
    Qp = _round_up(Q, 128)
    if Qp != Q:
        padq = ((0, 0), (0, 0), (0, Qp - Q))
        w_kq = jnp.pad(w_kq, padq)
        c_kq = jnp.pad(c_kq, padq)
        il_kq = jnp.pad(il_kq, padq)
        x = jnp.pad(x, ((0, 0), (0, Qp - Q)))

    # ---- batch tiling ---------------------------------------------------------
    if tb is None:
        tb = _round_up(B, 8) if B <= 256 else 256
    else:
        tb = _round_up(tb, 8)
    Bp = _round_up(B, tb)
    if Bp != B:
        x = jnp.pad(x, ((0, Bp - B), (0, 0)))
    n_batch = Bp // tb
    # Single (partially filled) batch tile: compute only the first B rows and
    # do a masked store -- don't burn EUP throughput on padded rows.
    b_active = B if n_batch == 1 else tb

    # ---- D tiling: modest blocks, >= ~8 grid steps when D allows -------------
    if td is None:
        td_cap = min(16, max(1, D // 8))
        td = max(t for t in range(1, min(D, td_cap) + 1) if D % t == 0)
    else:
        if D % td != 0:
            raise ValueError(f"td={td} must divide D={D}")
    n_dblk = D // td

    kernel = functools.partial(
        _rbf_kernel, td=td, qp=Qp, k=K, b_active=b_active, unroll=(td <= 8))

    rows = b_active * n_batch
    cost = pl.CostEstimate(
        flops=4 * rows * D * K * Qp,
        transcendentals=rows * D * K * Qp,
        bytes_accessed=(n_batch * 3 * D * K * Qp + Bp * Qp + Bp * D * Qp) * 4,
    )

    out_2d = pl.pallas_call(
        kernel,
        out_shape=jax.ShapeDtypeStruct((Bp, D * Qp), jnp.float32),
        grid=(n_batch, n_dblk),
        in_specs=[
            pl.BlockSpec((tb, Qp), lambda b, d: (b, 0)),          # x (reused over d)
            pl.BlockSpec((td, K, Qp), lambda b, d: (d, 0, 0)),    # w
            pl.BlockSpec((td, K, Qp), lambda b, d: (d, 0, 0)),    # c
            pl.BlockSpec((td, K, Qp), lambda b, d: (d, 0, 0)),    # log2e / l
        ],
        out_specs=pl.BlockSpec((tb, td * Qp), lambda b, d: (b, d)),
        compiler_params=pltpu.CompilerParams(
            dimension_semantics=("parallel", "parallel"),
            vmem_limit_bytes=32 * 1024 * 1024,
        ),
        cost_estimate=cost,
    )(x, w_kq, c_kq, il_kq)

    out = out_2d.reshape(Bp, D, Qp)   # free reshape (already lane-dense layout)
    return out[:B, :, :Q]             # drop batch / lane padding -> [B, D, Q]


def _reference(x_mean, w, c, l_raw):
    """Pure-JAX reference mirroring the PyTorch forward (x_var=None)."""
    l = jax.nn.softplus(l_raw) + 1e-6
    mu = (x_mean[..., None] - c) / l          # [B,1,Q,1] - [D,Q,K] -> [B,D,Q,K]
    res = jnp.exp(-jnp.abs(mu))
    return jnp.sum(res * w, axis=-1)          # [B, D, Q]


if __name__ == "__main__":
    # Module shapes: dim0=D (output dim), dim1=Q (input feature dim), num_comp=K.
    B, D, Q, K = 2, 4, 128, 8

    key = jax.random.PRNGKey(0)
    k1, k2, k3, k4 = jax.random.split(key, 4)

    x_mean = jax.random.normal(k1, (B, 1, Q), dtype=jnp.float32)
    # Deterministic synthetic params (torch init uses zeros for w/_l and randn
    # for c; randomized here with the same shapes so the kernel is exercised
    # non-trivially).
    w = 0.1 * jax.random.normal(k2, (D, Q, K), dtype=jnp.float32)
    c = jax.random.normal(k3, (D, Q, K), dtype=jnp.float32)
    l_raw = 0.1 * jax.random.normal(k4, (D, Q, K), dtype=jnp.float32)

    out = absolute_exponential_rbf(x_mean, w, c, l_raw)
    out = jax.block_until_ready(out)

    ref = _reference(x_mean, w, c, l_raw)
    assert out.shape == (B, D, Q), out.shape
    assert jnp.allclose(out, ref, atol=1e-5, rtol=1e-5), float(
        jnp.max(jnp.abs(out - ref)))

    print("KERNEL_OK")
</pallas_src>

<mosaic_0001>
module attributes {stable_mosaic.version = 11 : i64} {
  func.func @_rbf_kernel(%arg0: i32, %arg1: i32, %arg2: memref<8x128xf32, #tpu.memory_space<vmem>>, %arg3: memref<1x8x128xf32, #tpu.memory_space<vmem>>, %arg4: memref<1x8x128xf32, #tpu.memory_space<vmem>>, %arg5: memref<1x8x128xf32, #tpu.memory_space<vmem>>, %arg6: memref<8x128xf32, #tpu.memory_space<vmem>>) attributes {dimension_semantics = [#tpu.dimension_semantics<parallel>, #tpu.dimension_semantics<parallel>], iteration_bounds = array<i64: 1, 4>, scalar_prefetch = 0 : i64, scratch_operands = 0 : i64, tpu.core_type = #tpu.core_type<tc>, window_params = [{transform_indices = @transform_0, window_bounds = array<i64: 8, 128>}, {transform_indices = @transform_1, window_bounds = array<i64: 1, 8, 128>}, {transform_indices = @transform_2, window_bounds = array<i64: 1, 8, 128>}, {transform_indices = @transform_3, window_bounds = array<i64: 1, 8, 128>}, {transform_indices = @transform_4, window_bounds = array<i64: 8, 128>}]} {
    %c0 = arith.constant 0 : index
    %c0_0 = arith.constant 0 : index
    %0 = vector.load %arg2[%c0, %c0_0] : memref<8x128xf32, #tpu.memory_space<vmem>>, vector<2x128xf32>
    %1 = vector.shape_cast %0 : vector<2x128xf32> to vector<2x1x128xf32>
    %2 = vector.shape_cast %1 : vector<2x1x128xf32> to vector<2x1x128xf32>
    %3 = vector.broadcast %2 : vector<2x1x128xf32> to vector<2x8x128xf32>
    %c0_i32 = arith.constant 0 : i32
    %4 = arith.index_cast %c0_i32 : i32 to index
    %c0_1 = arith.constant 0 : index
    %c0_2 = arith.constant 0 : index
    %5 = vector.load %arg3[%4, %c0_1, %c0_2] : memref<1x8x128xf32, #tpu.memory_space<vmem>>, vector<1x8x128xf32>
    %6 = vector.shape_cast %5 : vector<1x8x128xf32> to vector<8x128xf32>
    %7 = arith.index_cast %c0_i32 : i32 to index
    %c0_3 = arith.constant 0 : index
    %c0_4 = arith.constant 0 : index
    %8 = vector.load %arg4[%7, %c0_3, %c0_4] : memref<1x8x128xf32, #tpu.memory_space<vmem>>, vector<1x8x128xf32>
    %9 = vector.shape_cast %8 : vector<1x8x128xf32> to vector<8x128xf32>
    %10 = arith.index_cast %c0_i32 : i32 to index
    %c0_5 = arith.constant 0 : index
    %c0_6 = arith.constant 0 : index
    %11 = vector.load %arg5[%10, %c0_5, %c0_6] : memref<1x8x128xf32, #tpu.memory_space<vmem>>, vector<1x8x128xf32>
    %12 = vector.shape_cast %11 : vector<1x8x128xf32> to vector<8x128xf32>
    %13 = vector.shape_cast %9 : vector<8x128xf32> to vector<1x8x128xf32>
    %14 = vector.broadcast %13 : vector<1x8x128xf32> to vector<2x8x128xf32>
    %15 = arith.subf %3, %14 : vector<2x8x128xf32>
    %16 = vector.shape_cast %12 : vector<8x128xf32> to vector<1x8x128xf32>
    %17 = vector.broadcast %16 : vector<1x8x128xf32> to vector<2x8x128xf32>
    %18 = arith.mulf %15, %17 : vector<2x8x128xf32>
    %19 = math.absf %18 : vector<2x8x128xf32>
    %cst = arith.constant 0.000000e+00 : f32
    %20 = vector.broadcast %cst : f32 to vector<2x8x128xf32>
    %21 = arith.subf %20, %19 : vector<2x8x128xf32>
    %22 = math.exp2 %21 : vector<2x8x128xf32>
    %23 = vector.shape_cast %6 : vector<8x128xf32> to vector<1x8x128xf32>
    %24 = vector.broadcast %23 : vector<1x8x128xf32> to vector<2x8x128xf32>
    %25 = arith.mulf %22, %24 : vector<2x8x128xf32>
    %c128_i32 = arith.constant 128 : i32
    %26 = arith.muli %c0_i32, %c128_i32 : i32
    %27 = tpu.assume_multiple %26, 128 : i32
    %cst_7 = arith.constant dense<0.000000e+00> : vector<2x128xf32>
    %28 = vector.multi_reduction <add>, %25, %cst_7 [1] : vector<2x8x128xf32> to vector<2x128xf32>
    %c0_8 = arith.constant 0 : index
    %29 = arith.index_cast %27 : i32 to index
    %30 = vector.load %arg6[%c0_8, %29] : memref<8x128xf32, #tpu.memory_space<vmem>>, vector<2x128xf32>
    tpu.vector_store %arg6[%c0_8, %29], %28 {strides = array<i32>} : memref<8x128xf32, #tpu.memory_space<vmem>>, vector<2x128xf32>,
    %c1_i32 = arith.constant 1 : i32
    return
  }
  func.func @transform_0(%arg0: i32, %arg1: i32) -> (i32, i32) {
    %c0_i32 = arith.constant 0 : i32
    %c0_i32_0 = arith.constant 0 : i32
    return %arg0, %c0_i32 : i32, i32
  }
  func.func @transform_1(%arg0: i32, %arg1: i32) -> (i32, i32, i32) {
    %c0_i32 = arith.constant 0 : i32
    %c0_i32_0 = arith.constant 0 : i32
    %c0_i32_1 = arith.constant 0 : i32
    return %arg1, %c0_i32, %c0_i32_0 : i32, i32, i32
  }
  func.func @transform_2(%arg0: i32, %arg1: i32) -> (i32, i32, i32) {
    %c0_i32 = arith.constant 0 : i32
    %c0_i32_0 = arith.constant 0 : i32
    %c0_i32_1 = arith.constant 0 : i32
    return %arg1, %c0_i32, %c0_i32_0 : i32, i32, i32
  }
  func.func @transform_3(%arg0: i32, %arg1: i32) -> (i32, i32, i32) {
    %c0_i32 = arith.constant 0 : i32
    %c0_i32_0 = arith.constant 0 : i32
    %c0_i32_1 = arith.constant 0 : i32
    return %arg1, %c0_i32, %c0_i32_0 : i32, i32, i32
  }
  func.func @transform_4(%arg0: i32, %arg1: i32) -> (i32, i32) {
    %c0_i32 = arith.constant 0 : i32
    return %arg0, %arg1 : i32, i32
  }
}

</mosaic_0001>

<bundles_post_ra>
// kernel: tpu_custom_call.1
= control target key start
LH: loop header
LB: loop body
LE: loop exit
PB: predicated region body
PF: predicated region fallthrough
CT: control target
= control target key end

     0   :  { %s1102_s0 = inlined_call_operand.hbm [shape: f32[8,128], index: 0, kind: input, shape index: {}]   ;;  %s1103_s1 = inlined_call_operand.hbm [shape: f32[4,8,128], index: 1, kind: input, shape index: {}]   ;;  %s1104_s2 = inlined_call_operand.hbm [shape: f32[4,8,128], index: 2, kind: input, shape index: {}]   ;;  %s1105_s3 = inlined_call_operand.hbm [shape: f32[4,8,128], index: 3, kind: input, shape index: {}]   ;;  %s1106_s4 = inlined_call_operand.hbm [shape: f32[8,512], index: 4, kind: output, shape index: {}]  }
   0x1   :  { %1113 = sst [smem:[#allocation16_spill]] %s1103_s1 }
   0x2   :  { %9 = vsyncpa [#allocation3], 0 }
   0x3   :  { %10 = vsyncpa [#allocation6], 0 }
   0x4   :  { %12 = vsyncpa [#allocation6 + $0x1], 0 }
   0x5   :  { %13 = vsyncpa [#allocation9], 0 }
   0x6   :  { %15 = vsyncpa [#allocation9 + $0x1], 0 }
   0x7   :  { %16 = vsyncpa [#allocation4], 0 }
   0x8   :  { %18 = vsyncpa [#allocation4 + $0x1], 0  ;;  %s879_s15 = smov 0   ;;  %s881_s16 = smov 0  }
   0x9   :  { %s883_s17 = smov 0   ;;  %s885_s18 = smov 0  }
   0xa   :  { %s887_s19 = smov 0   ;;  %s889_s20 = smov 0  }
   0xb LB: > { %s33_s21 = sadd.s32 1, %s842_s19  ;;  %s69_s22 = sadd.s32 1, %s834_s17  ;;  %s846_s20 = sphi %s889_s20, %s24_s20   ;;  %s842_s19 = sphi %s887_s19, %s1134_s19   ;;  %s838_s18 = sphi %s885_s18, %s1133_s18   ;;  %s834_s17 = sphi %s883_s17, %s1132_s17   ;;  %s830_s16 = sphi %s881_s16, %s1131_s16   ;;  %s826_s15 = sphi %s879_s15, %s1130_s15  }
   0xc   : > { %p34_p0 = scmp.ge.s32.totalorder %s33_s21, 4  ;;  %p76_p1 = scmp.ne.s32.totalorder %s834_s17, %s830_s16 }
   0xd   : > { %p77_p2 = scmp.eq.s32.totalorder %s846_s20, 0  ;;  %p591_p4 = scmp.lt.s32.totalorder %s846_s20, 4 }
   0xe   : > { %s1136_s21 = smov (%p34_p0, %s33_s21), 0  ;;  %s199_s24 = sand.u32 1, %s846_s20  }
   0xf   : > { %1114 = sst [smem:[#allocation15_spill]] %s1136_s21  ;;  %p78_p3 = por %p77_p2, %p76_p1 }
  0x10   : > { %s66_s23 = ssub.s32 %s842_s19, %s1136_s21  ;;  %s1107_s25 = sand.u32 1, %s834_s17  }
  0x11   : > { %p67_p5 = scmp.eq.s32.totalorder %s66_s23, 0  ;;  %s925_s26 = sshll.u32 %s842_s19, 7 }
  0x12   : > { %s932_s28 = sshll.u32 %s1107_s25, 3  ;;  %s1115_s1 = sld [smem:[#allocation16_spill]] }
  0x13   : > { %s928_s27 = scalar_select %p67_p5, %s834_s17, %s69_s22  }
  0x14   : > { %p938_p6 = pnand %p591_p4, %p78_p3  ;;  %s203_s7 = scalar_lea.vmem [#allocation5], %s932_s28 }
  0x15   : > { %s210_s8 = sshll.u32 %s203_s7, 4  ;;  %s943_s9 = scalar_lea.sflag [#allocation6], %s199_s24  ;;  %s211_s8 = int_to_ptr.vmem [resolvable:$true] %s210_s8 }
  0x16   : > { %p1111_p7 = pneg %p938_p6  ;;  %s661_s10 = scalar_lea.vmem %s211_s8, 128 }
  0x17   : > { %p662_p8 = scmp.ne.s32.totalorder %s211_s8, %s661_s10  ;;  %s848_s11 = smov [#allocation5]  }
  0x18   : > { %s208_s5 = scalar_lea.hbm %s1115_s1, %s925_s26  ;;  %s666_s12 = sshll.u32 %s848_s11, 4  ;;  %s667_s12 = int_to_ptr.vmem [resolvable:$false] %s666_s12 }
  0x19   : > { %p664_p9 = pnand %p662_p8, %p1111_p7  ;;  %s668_s13 = scalar_lea.vmem %s667_s12, 256 }
  0x1a   : > { %p669_p11 = scmp.lt.s32.totalorder %s211_s8, %s667_s12  ;;  %p670_p12 = scmp.lt.s32.totalorder %s668_s13, %s661_s10 }
  0x1b   : > { %p665_p10 = pneg %p664_p9 }
  0x1c   : > { %p671_p13 = por %p670_p12, %p669_p11 }
  0x1e   : > { %p672_p0 = pnand %p671_p13, %p665_p10 }
  0x20   : > { %675 = shalt.err (!%p672_p0)
}
  0x21   : > { %579 = dma.hbm_to_vmem [thread:$0]  (!%p938_p6), %s208_s5, 128, %s211_s8, %s943_s9  }
  0x22   : > { %s954_s14 = sadd.s32 4294967295, %s846_s20   ;;  %s539_s22 = sadd.s32 4294967294, %s846_s20  }
  0x23   : > { %p82_p2 = scmp.ne.s32.totalorder %s830_s16, %s826_s15  ;;  %p1110_p3 = scmp.eq.s32.totalorder %s954_s14, 0 }
  0x24   : > { %p160_p4 = scmp.eq.s32.totalorder %s954_s14, 3  ;;  %p166_p5 = scmp.eq.s32.totalorder %s539_s22, 3 }
  0x25   : > { %p540_p8 = scmp.ge.s32.totalorder %s846_s20, 1  ;;  %p964_p9 = por %p1110_p3, %p82_p2 }
  0x26   : > { %p971_p10 = por %p160_p4, %p76_p1  ;;  %p975_p11 = por %p166_p5, %p82_p2 }
  0x27   : > { %s1117_s23 = scalar_select %p964_p9, 1, 0 }
  0x28   : > { %s1118_s24 = scalar_select %p971_p10, 1, 0 }
  0x29   : > { %s1119_s29 = scalar_select %p975_p11, 1, 0 }
  0x2a   : > { %p173_p12 = scmp.lt.s32.totalorder %s846_s20, 5  ;;  %s849_s5 = smov [#allocation2]  }
  0x2b   : > { %s188_s7 = sshll.u32 %s849_s5, 4  ;;  %s226_s11 = scalar_lea.hbm %s1104_s2, %s925_s26  ;;  %s984_s7 = int_to_ptr.vmem [resolvable:$true] %s188_s7 }
  0x2c   : > { %p980_p13 = pnand %p540_p8, %p173_p12  ;;  %s221_s12 = scalar_lea.vmem [#allocation7], %s932_s28 }
  0x2d   : > { %s228_s13 = sshll.u32 %s221_s12, 4  ;;  %s850_s5 = smov [#allocation7]   ;;  %s229_s13 = int_to_ptr.vmem [resolvable:$true] %s228_s13 }
  0x2e   : > { %p572_p0 = pneg %p980_p13  ;;  %s689_s25 = scalar_lea.vmem %s229_s13, 128 }
  0x2f   : > { %p690_p2 = scmp.ne.s32.totalorder %s229_s13, %s689_s25  ;;  %s694_s1 = sshll.u32 %s850_s5, 4  ;;  %s695_s1 = int_to_ptr.vmem [resolvable:$false] %s694_s1 }
  0x30   : > { %p995_p1 = pnand %p572_p0, %p1110_p3  ;;  %s696_s21 = scalar_lea.vmem %s695_s1, 256 }
  0x31   : > { %p692_p4 = pnand %p690_p2, %p1111_p7  ;;  %p697_p8 = scmp.lt.s32.totalorder %s229_s13, %s695_s1 }
  0x32   : > { %p698_p12 = scmp.lt.s32.totalorder %s696_s21, %s689_s25 }
  0x33   : > { %p693_p5 = pneg %p692_p4 }
  0x34   : > { %p699_p11 = por %p698_p12, %p697_p8 }
  0x36   : > { %p700_p10 = pnand %p699_p11, %p693_p5 }
  0x38   : > { %703 = shalt.err (!%p700_p10)
}
  0x39   : > { %582 = dma.hbm_to_vmem [thread:$0]  (!%p938_p6), %s226_s11, 128, %s229_s13, %s943_s9  }
  0x3a   : > { %p706_p0 = pneg %p995_p1  ;;  %s715_s8 = scalar_lea.vmem %s984_s7, 128 }
  0x3b   : > { %p716_p2 = scmp.ne.s32.totalorder %s984_s7, %s715_s8  ;;  %p723_p7 = scmp.lt.s32.totalorder %s984_s7, %s984_s7 }
  0x3c   : > { %p724_p9 = scmp.lt.s32.totalorder %s715_s8, %s715_s8 }
  0x3d   : > { %p718_p4 = pnand %p716_p2, %p706_p0 }
  0x3e   : > { %p725_p8 = por %p724_p9, %p723_p7 }
  0x3f   : > { %p719_p3 = pneg %p718_p4 }
  0x41   : > { %p726_p11 = pnand %p725_p8, %p719_p3 }
  0x43   : > { %729 = shalt.err (!%p726_p11)
}
  0x44   : > { %575 = dma.hbm_to_vmem [thread:$0]  (!%p995_p1), %s1102_s0, 128, %s984_s7, [#allocation3]  }
  0x45   : > { %s244_s10 = scalar_lea.hbm %s1105_s3, %s925_s26  ;;  %s239_s11 = scalar_lea.vmem [#allocation8], %s932_s28 }
  0x46   : > { %s246_s12 = sshll.u32 %s239_s11, 4  ;;  %s1122_s13 = sand.u32 1, %s834_s17   ;;  %s247_s12 = int_to_ptr.vmem [resolvable:$true] %s246_s12 }
  0x47   : > { %s236_s5 = scalar_lea.sflag [#allocation9], %s1122_s13  ;;  %s743_s8 = scalar_lea.vmem %s247_s12, 128 }
  0x48   : > { %p744_p7 = scmp.ne.s32.totalorder %s247_s12, %s743_s8  ;;  %p1123_p3 = pneg %p938_p6 }
  0x49   : > { %s851_s22 = smov [#allocation8]  }
  0x4a   : > { %p746_p9 = pnand %p744_p7, %p1123_p3  ;;  %s748_s1 = sshll.u32 %s851_s22, 4  ;;  %s749_s1 = int_to_ptr.vmem [resolvable:$false] %s748_s1 }
  0x4b   : > { %s750_s21 = scalar_lea.vmem %s749_s1, 256  ;;  %p751_p1 = scmp.lt.s32.totalorder %s247_s12, %s749_s1 }
  0x4c   : > { %p747_p10 = pneg %p746_p9  ;;  %p752_p5 = scmp.lt.s32.totalorder %s750_s21, %s743_s8 }
  0x4e   : > { %p753_p12 = por %p752_p5, %p751_p1 }
  0x50   : > { %p754_p0 = pnand %p753_p12, %p747_p10 }
  0x52   : > { %757 = shalt.err (!%p754_p0)
}
  0x53   : > { %585 = dma.hbm_to_vmem [thread:$0]  (!%p938_p6), %s244_s10, 128, %s247_s12, %s236_s5  }
  0x54   : > { %255 = sbr.rel (%p980_p13) target bundleno = 160 (0xa0), region = 36  ;;  %p1124_p2 = scmp.eq.s32.totalorder (!%p980_p13), %s954_s14, 0 }
  0x59   : > { %809 = dma.done.wait (%p1124_p2), [#allocation3], 128   ;;  %p1125_p4 = pmov %p1124_p2 }
  0x5a   : > { %s261_s26 = sand.u32 1, %s954_s14   ;;  %s1037_s28 = sand.u32 1, %s830_s16  }
  0x5b   : > { %811 = vsyncadd (%p1125_p4), [#allocation3], 4294967168  ;;  %s1040_s7 = sshll.u32 %s1037_s28, 3  ;;  %s262_s6 = scalar_lea.sflag [#allocation6], %s261_s26 }
  0x5c   : > { %s265_s25 = scalar_lea.vmem [#allocation5], %s1040_s7  ;;  %p1126_p6 = scmp.ne.s32.totalorder %s1117_s23, 0 }
  0x5e   : > { %813 = dma.done.wait (%p1126_p6), %s262_s6, 256  }
  0x5f   : > { %815 = vsyncadd (%p1126_p6), %s262_s6, 4294967040  ;;  %s274_s30 = scalar_lea.vmem [#allocation7], %s1040_s7  ;;  %s280_s9 = scalar_lea.sflag [#allocation9], %s1037_s28 }
  0x60   : > { %s283_s14 = scalar_lea.vmem [#allocation8], %s1040_s7 }
  0x61   : > { %817 = dma.done.wait (%p1126_p6), %s280_s9, 128  }
  0x62   : > { %819 = vsyncadd (%p1126_p6), %s280_s9, 4294967168  ;;  %v331_v0 = vlaneseq  ;;  %v852_v1 = vmov 1966171168   ;;  %v353_v10 = vld [vmem:[%s274_s30] sm:$0xff]  ;;  %v354_v13 = vld [vmem:[%s283_s14] sm:$0xff]  ;;  %s317_s23 = scalar_lea.vmem [#allocation10], %s1040_s7 }
  0x63   : > { %v329_v2 = vunpack.c.l.s4 %v852_v1  ;;  %v555_v7 = vld.sshfl [vmem:[#allocation2] sm:$0x11 pattern:$0x75316420]  ;;  %v352_v23 = vld [vmem:[%s265_s25] sm:$0xff]  ;;  %s401_s10 = sshll.u32 %s317_s23, 4  ;;  %s1058_s10 = int_to_ptr.vmem [resolvable:$true] %s401_s10 }
  0x64   : > { %v332_v3 = vshrl.u32 %v331_v0, 7  ;;  %v327_v8 = vcombine.high %v555_v7, %v555_v7  ;;  %s557_s11 = sshll.u32 %s838_s18, 7  ;;  %vm381_vm0 = vcmask 1041409   ;;  %s386_s8 = scalar_lea.sflag [#allocation4], %s1037_s28 }
  0x65   : > { %v330_v4 = vunpack.c.0.s8 %v329_v2  ;;  %s399_s5 = scalar_lea.hbm %s1106_s4, %s557_s11  ;;  %s758_s22 = scalar_lea.vmem %s1058_s10, 128 }
  0x66   : > { %v344_v6 = vsub.s32 0, %v332_v3  ;;  %p759_p13 = scmp.ne.s32.totalorder %s1058_s10, %s758_s22  ;;  %p1127_p8 = scmp.ne.s32.totalorder %s1118_s24, 0 }
  0x67   : > { %v333_v5 = vsub.s32 %v330_v4, %v332_v3  ;;  %s853_s18 = smov [#allocation10]  }
  0x68   : > { %p760_p11 = pnand %p759_p13, %p1127_p8  ;;  %s762_s1 = sshll.u32 %s853_s18, 4  ;;  %s763_s1 = int_to_ptr.vmem [resolvable:$false] %s762_s1 }
  0x69   : > { %v334_v9 = vrot.slane %v555_v7, %v333_v5  ;;  %v341_v11 = vrot.slane %v327_v8, %v333_v5  ;;  %s764_s21 = scalar_lea.vmem %s763_s1, 256  ;;  %p765_p3 = scmp.lt.s32.totalorder %s1058_s10, %s763_s1 }
  0x6a   : > { %p761_p7 = pneg %p760_p11  ;;  %p766_p9 = scmp.lt.s32.totalorder %s764_s21, %s758_s22 }
  0x6b   : > { %v345_v12 = vrot.slane %v334_v9, %v344_v6  ;;  %v349_v14 = vrot.slane %v341_v11, %v344_v6 }
  0x6c   : > { %p767_p10 = por %p766_p9, %p765_p3 }
  0x6d   : > { %v355_v15 = vsub.f32 %v345_v12, %v353_v10  ;;  %v356_v16 = vsub.f32 %v349_v14, %v353_v10 }
  0x6e   : > { %p768_p1 = pnand %p767_p10, %p761_p7 }
  0x6f   : > { %v357_v17 = vmul.f32 %v355_v15, %v354_v13  ;;  %v358_v18 = vmul.f32 %v356_v16, %v354_v13 }
  0x71   : > { %v359_v19 = vand.u32 2147483647, %v357_v17  ;;  %v360_v20 = vand.u32 2147483647, %v358_v18 }
  0x73   : > { %v361_v21 = vsub.f32 0.0, %v359_v19  ;;  %v362_v22 = vsub.f32 0.0, %v360_v20 }
  0x75   : > { %644 = vpow2.f32 %v361_v21 }
  0x76   : > { %646 = vpow2.f32 %v362_v22 }
  0x82   : > { %v645_v24 = vpop.eup %644 }
  0x83   : > { %v365_v25 = vmul.f32 %v645_v24, %v352_v23  ;;  %v647_v26 = vpop.eup %646 }
  0x84   : > { %v366_v27 = vmul.f32 %v647_v26, %v352_v23 }
  0x85   : > { %v367_v28 = vrot.slane %v365_v25, 4 }
  0x86   : > { %v373_v30 = vrot.slane %v366_v27, 4 }
  0x87   : > { %v368_v29 = vadd.f32 %v367_v28, %v365_v25 }
  0x88   : > { %v374_v32 = vadd.f32 %v373_v30, %v366_v27 }
  0x89   : > { %v369_v31 = vrot.slane %v368_v29, 2 }
  0x8a   : > { %v375_v34 = vrot.slane %v374_v32, 2 }
  0x8b   : > { %v370_v33 = vadd.f32 %v369_v31, %v368_v29 }
  0x8c   : > { %v376_v36 = vadd.f32 %v375_v34, %v374_v32 }
  0x8d   : > { %v371_v35 = vrot.slane %v370_v33, 1 }
  0x8e   : > { %v377_v38 = vrot.slane %v376_v36, 1 }
  0x8f   : > { %v372_v37 = vadd.f32 %v371_v35, %v370_v33 }
  0x90   : > { %v378_v39 = vadd.f32 %v377_v38, %v376_v36 }
  0x92   : > { %v382_v40 = vsel %vm381_vm0, %v378_v39, %v372_v37 }
  0x93   : > { %384 = vst [vmem:[%s317_s23] sm:$0x3] %v382_v40 }
  0x94   : > { %771 = shalt.err (!%p768_p1)
}
  0x95   : > { %s772_s26 = scalar_lea.hbm %s399_s5, 128  ;;  %s776_s6 = scalar_lea.hbm %s1106_s4, 512 }
  0x96   : > { %p773_p5 = scmp.ne.s32.totalorder %s399_s5, %s772_s26  ;;  %p777_p2 = scmp.lt.s32.totalorder %s399_s5, %s1106_s4 }
  0x97   : > { %p778_p4 = scmp.lt.s32.totalorder %s776_s6, %s772_s26 }
  0x98   : > { %p774_p12 = pnand %p773_p5, %p1127_p8 }
  0x99   : > { %p779_p6 = por %p778_p4, %p777_p2 }
  0x9a   : > { %p775_p0 = pneg %p774_p12 }
  0x9c   : > { %p780_p13 = pnand %p779_p6, %p775_p0 }
  0x9e   : > { %783 = shalt.err (!%p780_p13)
}
  0x9f   : > { %570 = dma.vmem_to_hbm [thread:$0]  (%p1127_p8), %s1058_s10, 128, %s399_s5, %s386_s8  }
  0xa0 PF: > { %p593_p11 = scmp.ge.s32.totalorder %s846_s20, 2  ;;  %s413_s9 = sand.u32 1, %s826_s15  }
  0xa1   : > { %p1128_p7 = scmp.ne.s32.totalorder %s1119_s29, 0  ;;  %s414_s14 = scalar_lea.sflag [#allocation4], %s413_s9 }
  0xa3   : > { %p587_p3 = pnand %p593_p11, %p1128_p7 }
  0xa5   : > { %p588_p9 = pneg %p587_p3 }
  0xa7   : > { %821 = dma.done.wait (%p588_p9), %s414_s14, 128  }
  0xa8   : > { %823 = vsyncadd (%p588_p9), %s414_s14, 4294967168  ;;  %s24_s20 = sadd.s32 1, %s846_s20   ;;  %s1129_s24 = sld [smem:[#allocation15_spill]] }
  0xa9   : > { %p21_p10 = scmp.ge.s32.totalorder %s24_s20, 6   ;;  %s1130_s15 = smov %s830_s16 }
  0xaa   : > { %s1131_s16 = smov %s834_s17  ;;  %s1132_s17 = smov %s928_s27 }
  0xab   : > { %s1133_s18 = smov %s842_s19  ;;  %23 = sbr.rel (!%p21_p10) target bundleno = 11 (0xb), region = 111 }
  0xae   : > { %s1134_s19 = smov %s1129_s24 }
  0xb0   :  { %419 = vsyncpa [#allocation3], 1 }
  0xb1   :  { %421 = vsyncpa [#allocation3 + $0x1], 1 }
  0xb2   :  { %422 = vsyncpa [#allocation6], 1 }
  0xb3   :  { %424 = vsyncpa [#allocation6 + $0x1], 1 }
  0xb4   :  { %425 = vsyncpa [#allocation9], 1 }
  0xb5   :  { %427 = vsyncpa [#allocation9 + $0x1], 1 }
  0xb6   :  { %428 = vsyncpa [#allocation4], 1 }
  0xb7   :  { %430 = vsyncpa [#allocation4 + $0x1], 1 }

</bundles_post_ra>
